<compile_context>
chip_gen: v7x
topology: tpu7x:2x2x1
jax: 0.10.0
libtpu: 0.0.40
codegen_flags: <defaults>
</compile_context>

<pallas_src>
import functools

import jax
import jax.numpy as jnp
from jax.experimental import pallas as pl
from jax.experimental.pallas import tpu as pltpu

K = 5  # Conv1d kernel_size in the PyTorch module


def _round_up(x, m):
    return ((x + m - 1) // m) * m


def _conv1d_stack_kernel(has_fc, *refs):
    """Fused forward for one block of Bb batch elements (stacked along rows).

    refs (has_fc=True):
      x_ref  (Bb*T1p, K*Cin)   pre-unfolded conv1 im2col (wrapper-side)
      w1_ref (K*Cin, H)        b1_ref (1, H)
      w2_ref (K*H, H)          b2_ref (1, H)
      fcw_ref (H, NCp)         fcb_ref (1, NCp)
      o_ref  (Bb*P2p, out_ch)  float32
      s1_ref (Bb*T1p, H)       f32 scratch  (conv1 out, pooled via strided reads)
      s2_ref (Bb*P1p+8, H)     compute-dtype scratch (pool1 out + zero tail,
                                conv2 im2col source)
      s3_ref (Bb*P1p, H)       f32 scratch  (conv2 out, pooled via strided reads)
    """
    if has_fc:
        (x_ref, w1_ref, b1_ref, w2_ref, b2_ref, fcw_ref, fcb_ref,
         o_ref, s1_ref, s2_ref, s3_ref) = refs
    else:
        (x_ref, w1_ref, b1_ref, w2_ref, b2_ref,
         o_ref, s1_ref, s2_ref, s3_ref) = refs
        fcw_ref = fcb_ref = None

    H = s1_ref.shape[1]
    Mp1 = s3_ref.shape[0]          # Bb * P1p
    Mp2 = o_ref.shape[0]           # Bb * P2p
    tail = s2_ref.shape[0] - Mp1   # zero tail rows for the conv2 im2col reads
    cdt = w1_ref.dtype             # matmul compute dtype (f32 or bf16)

    # ---- conv1 (VALID, stride 1): ONE im2col matmul for the whole block ----
    y1 = jnp.dot(x_ref[...], w1_ref[...],
                 preferred_element_type=jnp.float32)       # (Bb*T1p, H) f32
    s1_ref[...] = jnp.maximum(y1 + b1_ref[...], 0.0)        # bias + ReLU (f32)

    # ---- maxpool1 (kernel 2, stride 2, floor) via strided scratch reads ----
    # T1p is even, so stride-2 pairs never cross batch-element boundaries.
    p1 = jnp.maximum(s1_ref[pl.ds(0, Mp1, stride=2), :],
                     s1_ref[pl.ds(1, Mp1, stride=2), :])     # (Bb*P1p, H) f32
    s2_ref[pl.ds(0, Mp1), :] = p1.astype(cdt)
    s2_ref[pl.ds(Mp1, tail), :] = jnp.zeros((tail, H), cdt)  # safe im2col tail

    # ---- conv2: ONE im2col matmul, contraction depth K*H ----
    # Shifted rows that cross element boundaries only feed rows that the
    # wrapper slices off (per-element valid length T2 < P1p).
    cols2 = jnp.concatenate(
        [s2_ref[pl.ds(k, Mp1), :] for k in range(K)], axis=1)  # (Bb*P1p, K*H)
    y2 = jnp.dot(cols2, w2_ref[...],
                 preferred_element_type=jnp.float32)         # (Bb*P1p, H) f32
    s3_ref[...] = jnp.maximum(y2 + b2_ref[...], 0.0)          # bias + ReLU (f32)

    # ---- maxpool2 ----
    p2 = jnp.maximum(s3_ref[pl.ds(0, Mp2, stride=2), :],
                     s3_ref[pl.ds(1, Mp2, stride=2), :])      # (Bb*P2p, H) f32

    if has_fc:
        out = jnp.dot(p2.astype(cdt), fcw_ref[...],
                      preferred_element_type=jnp.float32) + fcb_ref[...]
    else:
        pad = o_ref.shape[1] - H
        if pad > 0:   # lane-dense (unmasked) store; wrapper slices padding off
            out = jnp.concatenate(
                [p2, jnp.zeros((Mp2, pad), p2.dtype)], axis=1)
        else:
            out = p2
    o_ref[...] = out.astype(o_ref.dtype)


def conv1d_forward(x_bct, params, num_classes, *,
                   compute_dtype=jnp.float32, batch_block=None):
    """x_bct: (B, C_in, T) like PyTorch. Returns float32 (B, NC, (T-12)//4)."""
    B, Cin, T = x_bct.shape
    w1, b1 = params["w1"], params["b1"]            # (H, Cin, K), (H,)
    w2, b2 = params["w2"], params["b2"]            # (H, H,   K), (H,)
    H = w1.shape[0]

    T1 = T - (K - 1)
    P1 = T1 // 2
    T2 = P1 - (K - 1)
    P2 = T2 // 2
    has_fc = (num_classes != -1)

    # Per-element row strides in the stacked-M layout.  T1p is a multiple of
    # 32 so that P1p (=T1p/2) and P2p (=T1p/4) stay multiples of 8 and every
    # sublane offset / block row count is 8-aligned (no relayouts).
    T1p = _round_up(max(T1, 32), 32)
    P1p = T1p // 2
    P2p = T1p // 4

    # Batch elements per grid step: fold small batches into one step to
    # amortize the ~0.35us per-step overhead; for large B keep >= 4 grid
    # steps so the "parallel" axis shards across both v7x TensorCores and the
    # output writeback DMA stays hidden by the pipeline.
    if batch_block is None:
        if B >= 8:
            batch_block = min(64, -(-B // 4))      # ceil(B/4), capped at 64
        else:
            batch_block = B
    Bb = batch_block
    Bp = _round_up(B, Bb)

    # ---- wrapper-side prep (done once by XLA, not per grid step) ----
    # conv1 im2col: (B, C, T) -> (B, T1, K*Cin), column order k-major/ci-minor
    # (matches the (K, Cin) -> rows reshape of w1 below).
    x_btc = jnp.transpose(x_bct, (0, 2, 1)).astype(compute_dtype)  # (B, T, Cin)
    x_unf = jnp.concatenate([x_btc[:, k:k + T1, :] for k in range(K)], axis=2)
    x_unf = jnp.pad(x_unf, ((0, Bp - B), (0, T1p - T1), (0, 0)))
    x_stack = x_unf.reshape(Bp * T1p, K * Cin)

    w1_2d = jnp.transpose(w1, (2, 1, 0)).reshape(K * Cin, H).astype(compute_dtype)
    w2_2d = jnp.transpose(w2, (2, 1, 0)).reshape(K * H, H).astype(compute_dtype)
    b1_2d = b1.reshape(1, H).astype(jnp.float32)
    b2_2d = b2.reshape(1, H).astype(jnp.float32)

    in_specs = [
        pl.BlockSpec((Bb * T1p, K * Cin), lambda i: (i, 0)),
        pl.BlockSpec((K * Cin, H), lambda i: (0, 0)),
        pl.BlockSpec((1, H), lambda i: (0, 0)),
        pl.BlockSpec((K * H, H), lambda i: (0, 0)),
        pl.BlockSpec((1, H), lambda i: (0, 0)),
    ]
    inputs = [x_stack, w1_2d, b1_2d, w2_2d, b2_2d]

    if has_fc:
        NC = num_classes
        out_ch = _round_up(NC, 128)                # lane-dense output store
        fcw_p = jnp.pad(params["fc_w"].T.astype(compute_dtype),
                        ((0, 0), (0, out_ch - NC)))                # (H, NCp)
        fcb_p = jnp.pad(params["fc_b"].astype(jnp.float32).reshape(1, NC),
                        ((0, 0), (0, out_ch - NC)))                # (1, NCp)
        in_specs += [pl.BlockSpec((H, out_ch), lambda i: (0, 0)),
                     pl.BlockSpec((1, out_ch), lambda i: (0, 0))]
        inputs += [fcw_p, fcb_p]
    else:
        NC = H
        out_ch = _round_up(H, 128)                 # lane-dense even without fc

    itemsize = jnp.dtype(compute_dtype).itemsize
    flops = 2 * Bp * (T1p * K * Cin * H + P1p * K * H * H
                      + (P2p * H * out_ch if has_fc else 0))
    bytes_accessed = (int(x_stack.size) * itemsize
                      + (K * Cin * H + K * H * H) * itemsize + 2 * H * 4
                      + ((H * out_ch * itemsize + out_ch * 4) if has_fc else 0)
                      + Bp * P2p * out_ch * 4)

    out = pl.pallas_call(
        functools.partial(_conv1d_stack_kernel, has_fc),
        out_shape=jax.ShapeDtypeStruct((Bp * P2p, out_ch), jnp.float32),
        grid_spec=pltpu.PrefetchScalarGridSpec(
            num_scalar_prefetch=0,
            grid=(Bp // Bb,),
            in_specs=in_specs,
            out_specs=pl.BlockSpec((Bb * P2p, out_ch), lambda i: (i, 0)),
            scratch_shapes=[
                pltpu.VMEM((Bb * T1p, H), jnp.float32),        # conv1 out
                pltpu.VMEM((Bb * P1p + 8, H), compute_dtype),  # pool1 + tail
                pltpu.VMEM((Bb * P1p, H), jnp.float32),        # conv2 out
            ],
        ),
        compiler_params=pltpu.CompilerParams(
            dimension_semantics=("parallel",)),
        cost_estimate=pl.CostEstimate(
            flops=int(flops), transcendentals=0,
            bytes_accessed=int(bytes_accessed)),
    )(*inputs)

    # Drop batch / time / lane padding and return PyTorch (B, NC, P2) layout.
    out = out.reshape(Bp, P2p, out_ch)[:B, :P2, :NC]
    return jnp.transpose(out, (0, 2, 1))


def _reference_forward(x, params, num_classes):
    """Pure-JAX f32 reference mirroring the PyTorch forward (NCT layout)."""
    w1, b1, w2, b2 = params["w1"], params["b1"], params["w2"], params["b2"]

    def conv(x, w, b):                              # x:(B,C,T)  w:(O,I,K)
        T_out = x.shape[2] - (K - 1)
        y = sum(jnp.einsum('oi,bit->bot', w[:, :, k], x[:, :, k:k + T_out])
                for k in range(K))
        return y + b[None, :, None]

    def pool(y):                                    # MaxPool1d(2), floor mode
        B, C, T = y.shape
        P = T // 2
        return y[:, :, :2 * P].reshape(B, C, P, 2).max(-1)

    y = pool(jnp.maximum(conv(x, w1, b1), 0.0))
    y = pool(jnp.maximum(conv(y, w2, b2), 0.0))
    if num_classes != -1:
        y = jnp.einsum('bct,nc->bnt', y, params["fc_w"]) + params["fc_b"][None, :, None]
    return y


if __name__ == "__main__":
    B, C_IN, T = 2, 4, 64
    HIDDEN, NUM_CLASSES = 32, 10

    key = jax.random.PRNGKey(0)
    ks = jax.random.split(key, 7)
    params = {
        "w1": 0.1 * jax.random.normal(ks[0], (HIDDEN, C_IN, K), jnp.float32),
        "b1": 0.1 * jax.random.normal(ks[1], (HIDDEN,), jnp.float32),
        "w2": 0.1 * jax.random.normal(ks[2], (HIDDEN, HIDDEN, K), jnp.float32),
        "b2": 0.1 * jax.random.normal(ks[3], (HIDDEN,), jnp.float32),
        "fc_w": 0.1 * jax.random.normal(ks[4], (NUM_CLASSES, HIDDEN), jnp.float32),
        "fc_b": 0.1 * jax.random.normal(ks[5], (NUM_CLASSES,), jnp.float32),
    }
    x = jax.random.normal(ks[6], (B, C_IN, T), jnp.float32)

    ref = jax.block_until_ready(_reference_forward(x, params, NUM_CLASSES))

    # Default f32 compute path: matches the f32 PyTorch reference tightly.
    out_f32 = jax.block_until_ready(conv1d_forward(x, params, NUM_CLASSES))
    assert out_f32.shape == (B, NUM_CLASSES, (T - 12) // 4), out_f32.shape
    assert jnp.allclose(out_f32, ref, rtol=1e-4, atol=1e-4), \
        float(jnp.max(jnp.abs(out_f32 - ref)))

    # bf16-operand / f32-accumulate path: looser tolerance.
    out_bf16 = jax.block_until_ready(
        conv1d_forward(x, params, NUM_CLASSES, compute_dtype=jnp.bfloat16))
    assert out_bf16.shape == (B, NUM_CLASSES, (T - 12) // 4), out_bf16.shape
    assert jnp.allclose(out_bf16, ref, rtol=3e-2, atol=3e-2), \
        float(jnp.max(jnp.abs(out_bf16 - ref)))

    # num_classes == -1 path: fc matmul skipped, lane-padded output sliced off.
    ref_nofc = jax.block_until_ready(_reference_forward(x, params, -1))
    out_nofc = jax.block_until_ready(conv1d_forward(x, params, -1))
    assert out_nofc.shape == (B, HIDDEN, (T - 12) // 4), out_nofc.shape
    assert jnp.allclose(out_nofc, ref_nofc, rtol=1e-4, atol=1e-4), \
        float(jnp.max(jnp.abs(out_nofc - ref_nofc)))

    # Larger batch: exercises multi-step grid ("parallel" axis) + batch padding.
    B2 = 10
    x2 = jax.random.normal(jax.random.PRNGKey(1), (B2, C_IN, T), jnp.float32)
    ref2 = jax.block_until_ready(_reference_forward(x2, params, NUM_CLASSES))
    out2 = jax.block_until_ready(conv1d_forward(x2, params, NUM_CLASSES))
    assert out2.shape == (B2, NUM_CLASSES, (T - 12) // 4), out2.shape
    assert jnp.allclose(out2, ref2, rtol=1e-4, atol=1e-4), \
        float(jnp.max(jnp.abs(out2 - ref2)))

    print("KERNEL_OK")
</pallas_src>

<mosaic_0001>
module attributes {stable_mosaic.version = 11 : i64} {
  func.func @_conv1d_stack_kernel(%arg0: i32, %arg1: memref<128x20xf32, #tpu.memory_space<vmem>>, %arg2: memref<20x32xf32, #tpu.memory_space<vmem>>, %arg3: memref<1x32xf32, #tpu.memory_space<vmem>>, %arg4: memref<160x32xf32, #tpu.memory_space<vmem>>, %arg5: memref<1x32xf32, #tpu.memory_space<vmem>>, %arg6: memref<32x128xf32, #tpu.memory_space<vmem>>, %arg7: memref<1x128xf32, #tpu.memory_space<vmem>>, %arg8: memref<32x128xf32, #tpu.memory_space<vmem>>, %arg9: memref<128x32xf32, #tpu.memory_space<vmem>>, %arg10: memref<72x32xf32, #tpu.memory_space<vmem>>, %arg11: memref<64x32xf32, #tpu.memory_space<vmem>>) attributes {dimension_semantics = [#tpu.dimension_semantics<parallel>], iteration_bounds = array<i64: 1>, scalar_prefetch = 0 : i64, scratch_operands = 3 : i64, tpu.core_type = #tpu.core_type<tc>, window_params = [{transform_indices = @transform_0, window_bounds = array<i64: 128, 20>}, {pipeline_mode = #tpu.pipeline_mode<synchronous>, transform_indices = @transform_1, window_bounds = array<i64: 20, 32>}, {pipeline_mode = #tpu.pipeline_mode<synchronous>, transform_indices = @transform_2, window_bounds = array<i64: 1, 32>}, {pipeline_mode = #tpu.pipeline_mode<synchronous>, transform_indices = @transform_3, window_bounds = array<i64: 160, 32>}, {pipeline_mode = #tpu.pipeline_mode<synchronous>, transform_indices = @transform_4, window_bounds = array<i64: 1, 32>}, {pipeline_mode = #tpu.pipeline_mode<synchronous>, transform_indices = @transform_5, window_bounds = array<i64: 32, 128>}, {pipeline_mode = #tpu.pipeline_mode<synchronous>, transform_indices = @transform_6, window_bounds = array<i64: 1, 128>}, {transform_indices = @transform_7, window_bounds = array<i64: 32, 128>}]} {
    %c0 = arith.constant 0 : index
    %c0_0 = arith.constant 0 : index
    %0 = vector.load %arg1[%c0, %c0_0] : memref<128x20xf32, #tpu.memory_space<vmem>>, vector<128x20xf32>
    %c0_1 = arith.constant 0 : index
    %c0_2 = arith.constant 0 : index
    %1 = vector.load %arg2[%c0_1, %c0_2] : memref<20x32xf32, #tpu.memory_space<vmem>>, vector<20x32xf32>
    %cst = arith.constant dense<0.000000e+00> : vector<128x32xf32>
    %2 = tpu.matmul %0, %1, %cst {dimension_numbers = #tpu.dot_dimension_numbers<[1], [0], [0], [1], [0, 0, 1, 1], [], []>} : vector<128x20xf32>, vector<20x32xf32>, vector<128x32xf32> -> vector<128x32xf32>
    %c0_3 = arith.constant 0 : index
    %c0_4 = arith.constant 0 : index
    %3 = vector.load %arg3[%c0_3, %c0_4] : memref<1x32xf32, #tpu.memory_space<vmem>>, vector<1x32xf32>
    %4 = vector.broadcast %3 : vector<1x32xf32> to vector<128x32xf32>
    %5 = arith.addf %2, %4 : vector<128x32xf32>
    %cst_5 = arith.constant 0.000000e+00 : f32
    %6 = vector.broadcast %cst_5 : f32 to vector<128x32xf32>
    %7 = arith.maximumf %5, %6 : vector<128x32xf32>
    %c0_6 = arith.constant 0 : index
    %c0_7 = arith.constant 0 : index
    %8 = vector.load %arg9[%c0_6, %c0_7] : memref<128x32xf32, #tpu.memory_space<vmem>>, vector<128x32xf32>
    tpu.vector_store %arg9[%c0_6, %c0_7], %7 {strides = array<i32>} : memref<128x32xf32, #tpu.memory_space<vmem>>, vector<128x32xf32>,
    %c0_8 = arith.constant 0 : index
    %c0_9 = arith.constant 0 : index
    %9 = tpu.strided_load %arg9[%c0_8, %c0_9] {strides = array<i32: 2, 1>} : memref<128x32xf32, #tpu.memory_space<vmem>>, vector<64x32xf32>
    %c1 = arith.constant 1 : index
    %c0_10 = arith.constant 0 : index
    %10 = tpu.strided_load %arg9[%c1, %c0_10] {strides = array<i32: 2, 1>} : memref<128x32xf32, #tpu.memory_space<vmem>>, vector<64x32xf32>
    %11 = arith.maximumf %9, %10 : vector<64x32xf32>
    %c0_11 = arith.constant 0 : index
    %c0_12 = arith.constant 0 : index
    %12 = vector.load %arg10[%c0_11, %c0_12] : memref<72x32xf32, #tpu.memory_space<vmem>>, vector<64x32xf32>
    tpu.vector_store %arg10[%c0_11, %c0_12], %11 {strides = array<i32>} : memref<72x32xf32, #tpu.memory_space<vmem>>, vector<64x32xf32>,
    %cst_13 = arith.constant 0.000000e+00 : f32
    %13 = vector.broadcast %cst_13 : f32 to vector<8x32xf32>
    %c64 = arith.constant 64 : index
    %c0_14 = arith.constant 0 : index
    %14 = vector.load %arg10[%c64, %c0_14] : memref<72x32xf32, #tpu.memory_space<vmem>>, vector<8x32xf32>
    tpu.vector_store %arg10[%c64, %c0_14], %13 {strides = array<i32>} : memref<72x32xf32, #tpu.memory_space<vmem>>, vector<8x32xf32>,
    %c0_15 = arith.constant 0 : index
    %c0_16 = arith.constant 0 : index
    %15 = vector.load %arg10[%c0_15, %c0_16] : memref<72x32xf32, #tpu.memory_space<vmem>>, vector<64x32xf32>
    %c1_17 = arith.constant 1 : index
    %c0_18 = arith.constant 0 : index
    %16 = vector.load %arg10[%c1_17, %c0_18] : memref<72x32xf32, #tpu.memory_space<vmem>>, vector<64x32xf32>
    %c2 = arith.constant 2 : index
    %c0_19 = arith.constant 0 : index
    %17 = vector.load %arg10[%c2, %c0_19] : memref<72x32xf32, #tpu.memory_space<vmem>>, vector<64x32xf32>
    %c3 = arith.constant 3 : index
    %c0_20 = arith.constant 0 : index
    %18 = vector.load %arg10[%c3, %c0_20] : memref<72x32xf32, #tpu.memory_space<vmem>>, vector<64x32xf32>
    %c4 = arith.constant 4 : index
    %c0_21 = arith.constant 0 : index
    %19 = vector.load %arg10[%c4, %c0_21] : memref<72x32xf32, #tpu.memory_space<vmem>>, vector<64x32xf32>
    %20 = tpu.concatenate %15, %16, %17, %18, %19 in 1 : vector<64x32xf32>, vector<64x32xf32>, vector<64x32xf32>, vector<64x32xf32>, vector<64x32xf32> -> vector<64x160xf32>
    %c0_22 = arith.constant 0 : index
    %c0_23 = arith.constant 0 : index
    %21 = vector.load %arg4[%c0_22, %c0_23] : memref<160x32xf32, #tpu.memory_space<vmem>>, vector<160x32xf32>
    %cst_24 = arith.constant dense<0.000000e+00> : vector<64x32xf32>
    %22 = tpu.matmul %20, %21, %cst_24 {dimension_numbers = #tpu.dot_dimension_numbers<[1], [0], [0], [1], [0, 0, 1, 1], [], []>} : vector<64x160xf32>, vector<160x32xf32>, vector<64x32xf32> -> vector<64x32xf32>
    %c0_25 = arith.constant 0 : index
    %c0_26 = arith.constant 0 : index
    %23 = vector.load %arg5[%c0_25, %c0_26] : memref<1x32xf32, #tpu.memory_space<vmem>>, vector<1x32xf32>
    %24 = vector.broadcast %23 : vector<1x32xf32> to vector<64x32xf32>
    %25 = arith.addf %22, %24 : vector<64x32xf32>
    %cst_27 = arith.constant 0.000000e+00 : f32
    %26 = vector.broadcast %cst_27 : f32 to vector<64x32xf32>
    %27 = arith.maximumf %25, %26 : vector<64x32xf32>
    %c0_28 = arith.constant 0 : index
    %c0_29 = arith.constant 0 : index
    %28 = vector.load %arg11[%c0_28, %c0_29] : memref<64x32xf32, #tpu.memory_space<vmem>>, vector<64x32xf32>
    tpu.vector_store %arg11[%c0_28, %c0_29], %27 {strides = array<i32>} : memref<64x32xf32, #tpu.memory_space<vmem>>, vector<64x32xf32>,
    %c0_30 = arith.constant 0 : index
    %c0_31 = arith.constant 0 : index
    %29 = tpu.strided_load %arg11[%c0_30, %c0_31] {strides = array<i32: 2, 1>} : memref<64x32xf32, #tpu.memory_space<vmem>>, vector<32x32xf32>
    %c1_32 = arith.constant 1 : index
    %c0_33 = arith.constant 0 : index
    %30 = tpu.strided_load %arg11[%c1_32, %c0_33] {strides = array<i32: 2, 1>} : memref<64x32xf32, #tpu.memory_space<vmem>>, vector<32x32xf32>
    %31 = arith.maximumf %29, %30 : vector<32x32xf32>
    %c0_34 = arith.constant 0 : index
    %c0_35 = arith.constant 0 : index
    %32 = vector.load %arg6[%c0_34, %c0_35] : memref<32x128xf32, #tpu.memory_space<vmem>>, vector<32x128xf32>
    %cst_36 = arith.constant dense<0.000000e+00> : vector<32x128xf32>
    %33 = tpu.matmul %31, %32, %cst_36 {dimension_numbers = #tpu.dot_dimension_numbers<[1], [0], [0], [1], [0, 0, 1, 1], [], []>} : vector<32x32xf32>, vector<32x128xf32>, vector<32x128xf32> -> vector<32x128xf32>
    %c0_37 = arith.constant 0 : index
    %c0_38 = arith.constant 0 : index
    %34 = vector.load %arg7[%c0_37, %c0_38] : memref<1x128xf32, #tpu.memory_space<vmem>>, vector<1x128xf32>
    %35 = vector.broadcast %34 : vector<1x128xf32> to vector<32x128xf32>
    %36 = arith.addf %33, %35 : vector<32x128xf32>
    %c0_39 = arith.constant 0 : index
    %c0_40 = arith.constant 0 : index
    %37 = vector.load %arg8[%c0_39, %c0_40] : memref<32x128xf32, #tpu.memory_space<vmem>>, vector<32x128xf32>
    tpu.vector_store %arg8[%c0_39, %c0_40], %36 {strides = array<i32>} : memref<32x128xf32, #tpu.memory_space<vmem>>, vector<32x128xf32>,
    return
  }
  func.func @transform_0(%arg0: i32) -> (i32, i32) {
    %c0_i32 = arith.constant 0 : i32
    %c0_i32_0 = arith.constant 0 : i32
    return %arg0, %c0_i32 : i32, i32
  }
  func.func @transform_1(%arg0: i32) -> (i32, i32) {
    %c0_i32 = arith.constant 0 : i32
    %c0_i32_0 = arith.constant 0 : i32
    %c0_i32_1 = arith.constant 0 : i32
    return %c0_i32, %c0_i32_0 : i32, i32
  }
  func.func @transform_2(%arg0: i32) -> (i32, i32) {
    %c0_i32 = arith.constant 0 : i32
    %c0_i32_0 = arith.constant 0 : i32
    %c0_i32_1 = arith.constant 0 : i32
    return %c0_i32, %c0_i32_0 : i32, i32
  }
  func.func @transform_3(%arg0: i32) -> (i32, i32) {
    %c0_i32 = arith.constant 0 : i32
    %c0_i32_0 = arith.constant 0 : i32
    %c0_i32_1 = arith.constant 0 : i32
    return %c0_i32, %c0_i32_0 : i32, i32
  }
  func.func @transform_4(%arg0: i32) -> (i32, i32) {
    %c0_i32 = arith.constant 0 : i32
    %c0_i32_0 = arith.constant 0 : i32
    %c0_i32_1 = arith.constant 0 : i32
    return %c0_i32, %c0_i32_0 : i32, i32
  }
  func.func @transform_5(%arg0: i32) -> (i32, i32) {
    %c0_i32 = arith.constant 0 : i32
    %c0_i32_0 = arith.constant 0 : i32
    %c0_i32_1 = arith.constant 0 : i32
    return %c0_i32, %c0_i32_0 : i32, i32
  }
  func.func @transform_6(%arg0: i32) -> (i32, i32) {
    %c0_i32 = arith.constant 0 : i32
    %c0_i32_0 = arith.constant 0 : i32
    %c0_i32_1 = arith.constant 0 : i32
    return %c0_i32, %c0_i32_0 : i32, i32
  }
  func.func @transform_7(%arg0: i32) -> (i32, i32) {
    %c0_i32 = arith.constant 0 : i32
    %c0_i32_0 = arith.constant 0 : i32
    return %arg0, %c0_i32 : i32, i32
  }
}

</mosaic_0001>

<bundles_post_ra>
// kernel: tpu_custom_call.1
= control target key start
LH: loop header
LB: loop body
LE: loop exit
PB: predicated region body
PF: predicated region fallthrough
CT: control target
= control target key end

     0   :  { %vm53_vm0 = vcmask 162816   ;;  %vm102_vm1 = vcmask 1043456   ;;  %s1391_s0 = inlined_call_operand.vmem [shape: f32[128,20], index: 0, kind: input, shape index: {}]   ;;  %s1392_s1 = inlined_call_operand.vmem [shape: f32[20,32], index: 1, kind: input, shape index: {}]   ;;  %s1393_s2 = inlined_call_operand.vmem [shape: f32[1,32], index: 2, kind: input, shape index: {}]   ;;  %s1394_s3 = inlined_call_operand.vmem [shape: f32[160,32], index: 3, kind: input, shape index: {}]   ;;  %s1395_s4 = inlined_call_operand.vmem [shape: f32[1,32], index: 4, kind: input, shape index: {}]   ;;  %s1396_s5 = inlined_call_operand.vmem [shape: f32[32,128], index: 5, kind: input, shape index: {}]   ;;  %s1397_s6 = inlined_call_operand.vmem [shape: f32[1,128], index: 6, kind: input, shape index: {}]   ;;  %s1398_s7 = inlined_call_operand.hbm [shape: f32[32,128], index: 7, kind: output, shape index: {}]  }
   0x1   :  { %v43_v0 = vld [vmem:[%s1392_s1] sm:$0xff]  ;;  %v44_v1 = vld [vmem:[%s1392_s1 + $0x8] sm:$0xff]  ;;  %v45_v4 = vld [vmem:[%s1392_s1 + $0x10] sm:$0xf] }
   0x2   :  { %v916_v2 = vpack.c.bf16 %v44_v1, %v43_v0  ;;  %v27_v3 = vld [vmem:[%s1391_s0] sm:$0xff]  ;;  %v28_v5 = vld [vmem:[%s1391_s0 + $0x8] sm:$0xff] }
   0x3   :  { %878 = vmatprep.mubr.msk.f32.mxu0 %vm53_vm0, %v27_v3 }
   0x4   :  { %917 = vmatprep.subr.bf16.mxu0 %v916_v2 }
   0x5   :  { %919 = vmatpush3.bf16.msra.mxu0 %v916_v2 }
   0x6   :  { %876 = vmatprep.subr.msk.mxu0 %vm102_vm1, %v45_v4 }
   0x7   :  { %12 = vsyncpa [#allocation6], 0  ;;  %v29_v6 = vld [vmem:[%s1391_s0 + $0x10] sm:$0xff]  ;;  %v30_v7 = vld [vmem:[%s1391_s0 + $0x18] sm:$0xff]  ;;  %vm267_vm2 = vcmask 261120   ;;  %v1055_v20 = vmov 0.0  }
   0x8   :  { %v31_v8 = vld [vmem:[%s1391_s0 + $0x20] sm:$0xff]  ;;  %v32_v9 = vld [vmem:[%s1391_s0 + $0x28] sm:$0xff]  ;;  %v33_v10 = vld [vmem:[%s1391_s0 + $0x30] sm:$0xff]  ;;  %331 = vst.msk [vmem:[#allocation3 + $0x40] sm:$0xff] %vm267_vm2, %v1055_v20  ;;  %v1056_v24 = vmov 0.0|0.0   ;;  %s1058_s29 = smov 32  }
   0x9   :  { %877 = vmatpush3.msk.msra.mxu0 %vm102_vm1, %v45_v4  ;;  %v34_v11 = vld [vmem:[%s1391_s0 + $0x38] sm:$0xff]  ;;  %v35_v12 = vld [vmem:[%s1391_s0 + $0x40] sm:$0xff]  ;;  %v36_v13 = vld [vmem:[%s1391_s0 + $0x48] sm:$0xff]  ;;  %958 = vmatprep.subr.bf16.mxu1 %v1056_v24  ;;  %s1059_s30 = smov 64   ;;  %vm476_vm3 = vcmask 523264   ;;  %vm485_vm4 = vcmask 785408  }
   0xa   :  { %879 = vmatmul.mubr.msk.f32.vlgmr.msra.gmra.mrb[0].mxu0 %vm53_vm0, %v28_v5  ;;  %v37_v14 = vld [vmem:[%s1391_s0 + $0x50] sm:$0xff]  ;;  %v38_v15 = vld [vmem:[%s1391_s0 + $0x58] sm:$0xff]  ;;  %v39_v16 = vld [vmem:[%s1391_s0 + $0x60] sm:$0xff]  ;;  %920 = vmatprep.subr.bf16.mxu0 %v1056_v24  ;;  %s1060_s17 = smov [#allocation5]  }
   0xb   :  { %881 = vmatprep.mubr.msk.f32.mxu0 %vm53_vm0, %v29_v6  ;;  %v40_v17 = vld [vmem:[%s1391_s0 + $0x68] sm:$0xff]  ;;  %v41_v18 = vld [vmem:[%s1391_s0 + $0x70] sm:$0xff]  ;;  %v42_v19 = vld [vmem:[%s1391_s0 + $0x78] sm:$0xff]  ;;  %s802_s18 = sshll.u32 %s1060_s17, 4  ;;  %s803_s18 = int_to_ptr.vmem [resolvable:$true] %s802_s18 }
   0xc   :  { %v494_v21 = vld [vmem:[%s1394_s3] sm:$0xff]  ;;  %v495_v22 = vld [vmem:[%s1394_s3 + $0x8] sm:$0xff]  ;;  %v496_v23 = vld [vmem:[%s1394_s3 + $0x10] sm:$0xff]  ;;  %s1031_s19 = scalar_lea.vmem %s803_s18, 512  ;;  %p1036_p1 = scmp.lt.s32.totalorder %s803_s18, %s803_s18 }
   0xd   :  { %v921_v25 = vpack.c.bf16 %v495_v22, %v494_v21  ;;  %v497_v26 = vld [vmem:[%s1394_s3 + $0x18] sm:$0xff]  ;;  %v498_v28 = vld [vmem:[%s1394_s3 + $0x20] sm:$0xff]  ;;  %v499_v29 = vld [vmem:[%s1394_s3 + $0x28] sm:$0xff]  ;;  %p1032_p0 = scmp.ne.s32.totalorder %s803_s18, %s1031_s19  ;;  %p1037_p2 = scmp.lt.s32.totalorder %s1031_s19, %s1031_s19 }
   0xe   :  { %882 = vmatmul.mubr.msk.f32.gmra.mrb[2].mxu0 %vm53_vm0, %v30_v7  ;;  %v924_v27 = vpack.c.bf16 %v497_v26, %v496_v23  ;;  %v927_v30 = vpack.c.bf16 %v499_v29, %v498_v28  ;;  %v500_v31 = vld [vmem:[%s1394_s3 + $0x30] sm:$0xff]  ;;  %v501_v32 = vld [vmem:[%s1394_s3 + $0x38] sm:$0xff]  ;;  %v502_v34 = vld [vmem:[%s1394_s3 + $0x40] sm:$0xff] }
   0xf   :  { %884 = vmatprep.mubr.msk.f32.mxu0 %vm53_vm0, %v31_v8  ;;  %968 = vmatpush1.bf16.msra.mxu1 %v921_v25  ;;  %v930_v33 = vpack.c.bf16 %v501_v32, %v500_v31  ;;  %v503_v35 = vld [vmem:[%s1394_s3 + $0x48] sm:$0xff]  ;;  %v504_v37 = vld [vmem:[%s1394_s3 + $0x50] sm:$0xff]  ;;  %v505_v38 = vld [vmem:[%s1394_s3 + $0x58] sm:$0xff]  ;;  %p1038_p3 = por %p1037_p2, %p1036_p1 }
  0x10   :  { %922 = vmatpush1.bf16.msra.mxu0 %v921_v25  ;;  %959 = vmatprep.subr.bf16.mxu1 %v1056_v24  ;;  %v933_v36 = vpack.c.bf16 %v503_v35, %v502_v34  ;;  %v936_v39 = vpack.c.bf16 %v505_v38, %v504_v37  ;;  %v506_v40 = vld [vmem:[%s1394_s3 + $0x60] sm:$0xff]  ;;  %v507_v41 = vld [vmem:[%s1394_s3 + $0x68] sm:$0xff]  ;;  %v508_v43 = vld [vmem:[%s1394_s3 + $0x70] sm:$0xff] }
  0x11   :  { %923 = vmatprep.subr.bf16.mxu0 %v1056_v24  ;;  %v939_v42 = vpack.c.bf16 %v507_v41, %v506_v40  ;;  %v509_v44 = vld [vmem:[%s1394_s3 + $0x78] sm:$0xff]  ;;  %v1246_v46 = vld [vmem:[%s1393_s2] ss:$0 sm:$0xff]  ;;  %v511_v41 = vld [vmem:[%s1394_s3 + $0x88] sm:$0xff]  ;;  %p1039_p4 = pnand %p1038_p3, %p1032_p0 }
  0x12   :  { %885 = vmatmul.mubr.msk.f32.gmra.mrb[4].mxu0 %vm53_vm0, %v32_v9  ;;  %v942_v45 = vpack.c.bf16 %v509_v44, %v508_v43  ;;  %v510_v40 = vld [vmem:[%s1394_s3 + $0x80] sm:$0xff] }
  0x13   :  { %887 = vmatprep.mubr.msk.f32.mxu0 %vm53_vm0, %v33_v10  ;;  %969 = vmatpush1.bf16.msra.mxu1 %v924_v27 }
  0x14   :  { %925 = vmatpush1.bf16.msra.mxu0 %v924_v27  ;;  %960 = vmatprep.subr.bf16.mxu1 %v1056_v24 }
  0x15   :  { %926 = vmatprep.subr.bf16.mxu0 %v1056_v24 }
  0x16   :  { %888 = vmatmul.mubr.msk.f32.gmra.mrb[6].mxu0 %vm53_vm0, %v34_v11 }
  0x17   :  { %890 = vmatprep.mubr.msk.f32.mxu0 %vm53_vm0, %v35_v12  ;;  %970 = vmatpush1.bf16.msra.mxu1 %v927_v30 }
  0x18   :  { %928 = vmatpush1.bf16.msra.mxu0 %v927_v30  ;;  %961 = vmatprep.subr.bf16.mxu1 %v1056_v24 }
  0x19   :  { %929 = vmatprep.subr.bf16.mxu0 %v1056_v24 }
  0x1a   :  { %891 = vmatmul.mubr.msk.f32.gmra.mrb[8].mxu0 %vm53_vm0, %v36_v13 }
  0x1b   :  { %893 = vmatprep.mubr.msk.f32.mxu0 %vm53_vm0, %v37_v14  ;;  %971 = vmatpush1.bf16.msra.mxu1 %v930_v33 }
  0x1c   :  { %931 = vmatpush1.bf16.msra.mxu0 %v930_v33  ;;  %962 = vmatprep.subr.bf16.mxu1 %v1056_v24 }
  0x1d   :  { %932 = vmatprep.subr.bf16.mxu0 %v1056_v24 }
  0x1e   :  { %894 = vmatmul.mubr.msk.f32.gmra.mrb[10].mxu0 %vm53_vm0, %v38_v15 }
  0x1f   :  { %896 = vmatprep.mubr.msk.f32.mxu0 %vm53_vm0, %v39_v16  ;;  %972 = vmatpush1.bf16.msra.mxu1 %v933_v36 }
  0x20   :  { %934 = vmatpush1.bf16.msra.mxu0 %v933_v36  ;;  %963 = vmatprep.subr.bf16.mxu1 %v1056_v24 }
  0x21   :  { %935 = vmatprep.subr.bf16.mxu0 %v1056_v24 }
  0x22   :  { %897 = vmatmul.mubr.msk.f32.gmra.mrb[12].mxu0 %vm53_vm0, %v40_v17 }
  0x23   :  { %899 = vmatprep.mubr.msk.f32.mxu0 %vm53_vm0, %v41_v18  ;;  %973 = vmatpush1.bf16.msra.mxu1 %v936_v39 }
  0x24   :  { %937 = vmatpush1.bf16.msra.mxu0 %v936_v39  ;;  %964 = vmatprep.subr.bf16.mxu1 %v1056_v24 }
  0x25   :  { %938 = vmatprep.subr.bf16.mxu0 %v1056_v24 }
  0x26   :  { %900 = vmatmul.mubr.msk.f32.gmra.mrb[14].mxu0 %vm53_vm0, %v42_v19 }
  0x27   :  { %974 = vmatpush1.bf16.msra.mxu1 %v939_v42 }
  0x28   :  { %940 = vmatpush1.bf16.msra.mxu0 %v939_v42  ;;  %965 = vmatprep.subr.bf16.mxu1 %v1056_v24 }
  0x29   :  { %941 = vmatprep.subr.bf16.mxu0 %v1056_v24 }
  0x2b   :  { %975 = vmatpush1.bf16.msra.mxu1 %v942_v45 }
  0x2c   :  { %943 = vmatpush1.bf16.msra.mxu0 %v942_v45  ;;  %966 = vmatprep.subr.bf16.mxu1 %v1056_v24 }
  0x2d   :  { %944 = vmatprep.subr.bf16.mxu0 %v1056_v24 }
  0xdd   :  { %v880_v47 = vpop.f32.mrb[0].mxu0 }
  0xde   :  { %v178_v48 = vadd.f32 %v880_v47, %v1246_v46  ;;  %v172_v49 = vpop.f32.mrb[1].mxu0  ;;  %v945_v47 = vpack.c.bf16 %v511_v41, %v510_v40 }
  0xdf   :  { %v173_v50 = vadd.f32 %v1246_v46, %v172_v49 }
  0xe0   :  { %v252_v51 = vmax.f32 %v178_v48, 0.0  ;;  %976 = vmatpush1.bf16.msra.mxu1 %v945_v47  ;;  %946 = vmatpush1.bf16.msra.mxu0 %v945_v47 }
  0xe1   :  { %v251_v52 = vmax.f32 %v173_v50, 0.0  ;;  %v883_v53 = vpop.f32.mrb[2].mxu0  ;;  %967 = vmatprep.subr.bf16.mxu1 %v1056_v24  ;;  %947 = vmatprep.subr.bf16.mxu0 %v1056_v24 }
  0xe2   :  { %269 = vst.msk [vmem:[#allocation2 + $0x8] sm:$0xff] %vm267_vm2, %v252_v51  ;;  %v188_v54 = vadd.f32 %v883_v53, %v1246_v46  ;;  %v182_v55 = vpop.f32.mrb[3].mxu0  ;;  %v513_v53 = vld [vmem:[%s1394_s3 + $0x98] sm:$0xff] }
  0xe3   :  { %268 = vst.msk [vmem:[#allocation2] sm:$0xff] %vm267_vm2, %v251_v52  ;;  %v183_v56 = vadd.f32 %v1246_v46, %v182_v55  ;;  %v512_v52 = vld [vmem:[%s1394_s3 + $0x90] sm:$0xff]  ;;  %s1057_s3 = smov 96  }
  0xe4   :  { %v254_v57 = vmax.f32 %v188_v54, 0.0  ;;  %v948_v55 = vpack.c.bf16 %v513_v53, %v512_v52 }
  0xe5   :  { %v253_v58 = vmax.f32 %v183_v56, 0.0  ;;  %v886_v59 = vpop.f32.mrb[4].mxu0 }
  0xe6   :  { %271 = vst.msk [vmem:[#allocation2 + $0x18] sm:$0xff] %vm267_vm2, %v254_v57  ;;  %v198_v60 = vadd.f32 %v886_v59, %v1246_v46  ;;  %v192_v61 = vpop.f32.mrb[5].mxu0  ;;  %977 = vmatpush1.bf16.msra.mxu1 %v948_v55  ;;  %949 = vmatpush1.bf16.msra.mxu0 %v948_v55 }
  0xe7   :  { %270 = vst.msk [vmem:[#allocation2 + $0x10] sm:$0xff] %vm267_vm2, %v253_v58  ;;  %v193_v62 = vadd.f32 %v1246_v46, %v192_v61 }
  0xe8   :  { %v256_v63 = vmax.f32 %v198_v60, 0.0 }
  0xe9   :  { %v255_v0 = vmax.f32 %v193_v62, 0.0  ;;  %v889_v1 = vpop.f32.mrb[6].mxu0 }
  0xea   :  { %v284_v2 = vld [vmem:[#allocation2] ss:$2 sm:$0xff]  ;;  %v300_v3 = vld [vmem:[#allocation2 + $0x1] ss:$2 sm:$0xff]  ;;  %273 = vst.msk [vmem:[#allocation2 + $0x28] sm:$0xff] %vm267_vm2, %v256_v63  ;;  %v208_v4 = vadd.f32 %v889_v1, %v1246_v46  ;;  %v202_v5 = vpop.f32.mrb[7].mxu0 }
  0xeb   :  { %v315_v6 = vmax.f32 %v284_v2, %v300_v3  ;;  %272 = vst.msk [vmem:[#allocation2 + $0x20] sm:$0xff] %vm267_vm2, %v255_v0  ;;  %v203_v7 = vadd.f32 %v1246_v46, %v202_v5 }
  0xec   :  { %v258_v8 = vmax.f32 %v208_v4, 0.0 }
  0xed   :  { %323 = vst.msk [vmem:[#allocation3] sm:$0xff] %vm267_vm2, %v315_v6  ;;  %v257_v9 = vmax.f32 %v203_v7, 0.0  ;;  %v892_v10 = vpop.f32.mrb[8].mxu0 }
  0xee   :  { %v286_v11 = vld [vmem:[#allocation2 + $0x10] ss:$2 sm:$0xff]  ;;  %v302_v12 = vld [vmem:[#allocation2 + $0x11] ss:$2 sm:$0xff]  ;;  %275 = vst.msk [vmem:[#allocation2 + $0x38] sm:$0xff] %vm267_vm2, %v258_v8  ;;  %v218_v13 = vadd.f32 %v892_v10, %v1246_v46  ;;  %v212_v14 = vpop.f32.mrb[9].mxu0 }
  0xef   :  { %v316_v15 = vmax.f32 %v286_v11, %v302_v12  ;;  %274 = vst.msk [vmem:[#allocation2 + $0x30] sm:$0xff] %vm267_vm2, %v257_v9  ;;  %v213_v16 = vadd.f32 %v1246_v46, %v212_v14 }
  0xf0   :  { %v260_v17 = vmax.f32 %v218_v13, 0.0 }
  0xf1   :  { %324 = vst.msk [vmem:[#allocation3 + $0x8] sm:$0xff] %vm267_vm2, %v316_v15  ;;  %v259_v18 = vmax.f32 %v213_v16, 0.0  ;;  %v895_v19 = vpop.f32.mrb[10].mxu0 }
  0xf2   :  { %v288_v20 = vld [vmem:[#allocation2 + $0x20] ss:$2 sm:$0xff]  ;;  %v304_v21 = vld [vmem:[#allocation2 + $0x21] ss:$2 sm:$0xff]  ;;  %277 = vst.msk [vmem:[#allocation2 + $0x48] sm:$0xff] %vm267_vm2, %v260_v17  ;;  %v228_v22 = vadd.f32 %v895_v19, %v1246_v46  ;;  %v222_v23 = vpop.f32.mrb[11].mxu0 }
  0xf3   :  { %276 = vst.msk [vmem:[#allocation2 + $0x40] sm:$0xff] %vm267_vm2, %v259_v18  ;;  %v223_v25 = vadd.f32 %v1246_v46, %v222_v23  ;;  %v317_v26 = vmax.f32 %v288_v20, %v304_v21 }
  0xf4   :  { %v262_v27 = vmax.f32 %v228_v22, 0.0  ;;  %v332_v53 = vld [vmem:[#allocation3] sm:$0xff] }
  0xf5   :  { %v261_v28 = vmax.f32 %v223_v25, 0.0  ;;  %v898_v29 = vpop.f32.mrb[12].mxu0  ;;  %325 = vst.msk [vmem:[#allocation3 + $0x10] sm:$0xff] %vm267_vm2, %v317_v26 }
  0xf6   :  { %v290_v30 = vld [vmem:[#allocation2 + $0x30] ss:$2 sm:$0xff]  ;;  %v306_v31 = vld [vmem:[#allocation2 + $0x31] ss:$2 sm:$0xff]  ;;  %279 = vst.msk [vmem:[#allocation2 + $0x58] sm:$0xff] %vm267_vm2, %v262_v27  ;;  %v238_v32 = vadd.f32 %v898_v29, %v1246_v46  ;;  %v232_v33 = vpop.f32.mrb[13].mxu0 }
  0xf7   :  { %278 = vst.msk [vmem:[#allocation2 + $0x50] sm:$0xff] %vm267_vm2, %v261_v28  ;;  %v233_v34 = vadd.f32 %v1246_v46, %v232_v33  ;;  %v318_v35 = vmax.f32 %v290_v30, %v306_v31 }
  0xf8   :  { %v264_v36 = vmax.f32 %v238_v32, 0.0  ;;  %v364_v37 = vld [vmem:[#allocation3 + $0x4] sm:$0xff] }
  0xf9   :  { %v263_v38 = vmax.f32 %v233_v34, 0.0  ;;  %v901_v39 = vpop.f32.mrb[14].mxu0  ;;  %832 = vmatprep.mubr.msk.f32.mxu0 %vm267_vm2, %v364_v37  ;;  %326 = vst.msk [vmem:[#allocation3 + $0x18] sm:$0xff] %vm267_vm2, %v318_v35  ;;  %v340_v7 = vld [vmem:[#allocation3 + $0x1] sm:$0xff] }
  0xfa   :  { %v292_v42 = vld [vmem:[#allocation2 + $0x40] ss:$2 sm:$0xff]  ;;  %v308_v43 = vld [vmem:[#allocation2 + $0x41] ss:$2 sm:$0xff]  ;;  %281 = vst.msk [vmem:[#allocation2 + $0x68] sm:$0xff] %vm267_vm2, %v264_v36  ;;  %v248_v44 = vadd.f32 %v901_v39, %v1246_v46  ;;  %v242_v45 = vpop.f32.mrb[15].mxu0 }
  0xfb   :  { %v319_v48 = vmax.f32 %v292_v42, %v308_v43  ;;  %280 = vst.msk [vmem:[#allocation2 + $0x60] sm:$0xff] %vm267_vm2, %v263_v38  ;;  %v243_v49 = vadd.f32 %v1246_v46, %v242_v45  ;;  %v348_v13 = vld [vmem:[#allocation3 + $0x2] sm:$0xff] }
  0xfc   :  { %v266_v50 = vmax.f32 %v248_v44, 0.0  ;;  %v356_v14 = vld [vmem:[#allocation3 + $0x3] sm:$0xff]  ;;  %v357_v25 = vld [vmem:[#allocation3 + $0xb] sm:$0xff] }
  0xfd   :  { %327 = vst.msk [vmem:[#allocation3 + $0x20] sm:$0xff] %vm267_vm2, %v319_v48  ;;  %v265_v51 = vmax.f32 %v243_v49, 0.0  ;;  %v341_v19 = vld [vmem:[#allocation3 + $0x9] sm:$0xff] }
  0xfe   :  { %v294_v54 = vld [vmem:[#allocation2 + $0x50] ss:$2 sm:$0xff]  ;;  %v310_v46 = vld [vmem:[#allocation2 + $0x51] ss:$2 sm:$0xff]  ;;  %283 = vst.msk [vmem:[#allocation2 + $0x78] sm:$0xff] %vm267_vm2, %v266_v50 }
  0xff   :  { %v320_v56 = vmax.f32 %v294_v54, %v310_v46  ;;  %282 = vst.msk [vmem:[#allocation2 + $0x70] sm:$0xff] %vm267_vm2, %v265_v51  ;;  %v349_v20 = vld [vmem:[#allocation3 + $0xa] sm:$0xff] }
 0x100   :  { %v366_v57 = vld [vmem:[#allocation3 + $0x14] sm:$0xff] }
 0x101   :  { %328 = vst.msk [vmem:[#allocation3 + $0x28] sm:$0xff] %vm267_vm2, %v320_v56  ;;  %834 = vmatprep.mubr.msk.f32.mxu1 %vm267_vm2, %v366_v57  ;;  %v358_v61 = vld [vmem:[#allocation3 + $0x13] sm:$0xff] }
 0x102   :  { %v296_v58 = vld [vmem:[#allocation2 + $0x60] ss:$2 sm:$0xff]  ;;  %v312_v59 = vld [vmem:[#allocation2 + $0x61] ss:$2 sm:$0xff]  ;;  %v342_v62 = vld [vmem:[#allocation3 + $0x11] sm:$0xff] }
 0x103   :  { %v321_v60 = vmax.f32 %v296_v58, %v312_v59  ;;  %v350_v6 = vld [vmem:[#allocation3 + $0x12] sm:$0xff] }
 0x104   :  { %v359_v24 = vld [vmem:[#allocation3 + $0x1b] sm:$0xff]  ;;  %v334_v41 = vld [vmem:[#allocation3 + $0x10] sm:$0xff] }
 0x105   :  { %v343_v63 = vld [vmem:[#allocation3 + $0x19] sm:$0xff]  ;;  %329 = vst.msk [vmem:[#allocation3 + $0x30] sm:$0xff] %vm267_vm2, %v321_v60  ;;  %v996_v0 = vpack.i.bf16 %v359_v24, %v358_v61 }
 0x106   :  { %v986_v1 = vpack.i.bf16 %v343_v63, %v342_v62  ;;  %v298_v2 = vld [vmem:[#allocation2 + $0x70] ss:$2 sm:$0xff]  ;;  %v314_v3 = vld [vmem:[#allocation2 + $0x71] ss:$2 sm:$0xff]  ;;  %v336_v61 = vld [vmem:[#allocation3 + $0x20] sm:$0xff] }
 0x107   :  { %v351_v4 = vld [vmem:[#allocation3 + $0x1a] sm:$0xff]  ;;  %997 = vrot.lane.b32.xlu1 %v996_v0, %s1057_s3  ;;  %v322_v5 = vmax.f32 %v298_v2, %v314_v3 }
 0x108   :  { %987 = vrot.lane.b32.xlu0 %v986_v1, %s1058_s29  ;;  %v344_v8 = vld [vmem:[#allocation3 + $0x21] sm:$0xff]  ;;  %v991_v9 = vpack.i.bf16 %v351_v4, %v350_v6  ;;  %v335_v47 = vld [vmem:[#allocation3 + $0x18] sm:$0xff] }
 0x109   :  { %v1001_v10 = vpack.i.bf16 %v340_v7, %v344_v8  ;;  %330 = vst.msk [vmem:[#allocation3 + $0x38] sm:$0xff] %vm267_vm2, %v322_v5  ;;  %v352_v11 = vld [vmem:[#allocation3 + $0x22] sm:$0xff]  ;;  %v365_v5 = vld [vmem:[#allocation3 + $0xc] sm:$0xff] }
 0x10a   :  { %v360_v12 = vld [vmem:[#allocation3 + $0x23] sm:$0xff]  ;;  %v1006_v15 = vpack.i.bf16 %v348_v13, %v352_v11 }
 0x10b   :  { %1002 = vrot.lane.b32.xlu1 %v1001_v10, %s1058_s29  ;;  %v1011_v16 = vpack.i.bf16 %v356_v14, %v360_v12  ;;  %v367_v56 = vld [vmem:[#allocation3 + $0x1c] sm:$0xff]  ;;  %v368_v6 = vld [vmem:[#allocation3 + $0x24] sm:$0xff] }
 0x10c   :  { %992 = vrot.lane.b32.xlu0 %v991_v9, %s1059_s30  ;;  %v345_v17 = vld [vmem:[#allocation3 + $0x29] sm:$0xff] }
 0x10d   :  { %v353_v18 = vld [vmem:[#allocation3 + $0x2a] sm:$0xff]  ;;  %v1016_v21 = vpack.i.bf16 %v341_v19, %v345_v17 }
 0x10e   :  { %v1021_v22 = vpack.i.bf16 %v349_v20, %v353_v18  ;;  %v361_v23 = vld [vmem:[#allocation3 + $0x2b] sm:$0xff] }
 0x10f   :  { %1012 = vrot.lane.b32.xlu1 %v1011_v16, %s1057_s3  ;;  %v1026_v26 = vpack.i.bf16 %v357_v25, %v361_v23  ;;  %v333_v10 = vld [vmem:[#allocation3 + $0x8] sm:$0xff] }
 0x110   :  { %1007 = vrot.lane.b32.xlu0 %v1006_v15, %s1059_s30  ;;  %v346_v27 = vld [vmem:[#allocation3 + $0x31] sm:$0xff]  ;;  %v347_v30 = vld [vmem:[#allocation3 + $0x39] sm:$0xff]  ;;  %v337_v11 = vld [vmem:[#allocation3 + $0x28] sm:$0xff] }
 0x111   :  { %v354_v28 = vld [vmem:[#allocation3 + $0x32] sm:$0xff]  ;;  %v355_v31 = vld [vmem:[#allocation3 + $0x3a] sm:$0xff] }
 0x112   :  { %v362_v29 = vld [vmem:[#allocation3 + $0x33] sm:$0xff]  ;;  %v363_v32 = vld [vmem:[#allocation3 + $0x3b] sm:$0xff] }
 0x113   :  { %1022 = vrot.lane.b32.xlu1 %v1021_v22, %s1059_s30  ;;  %v369_v19 = vld [vmem:[#allocation3 + $0x2c] sm:$0xff] }
 0x114   :  { %1017 = vrot.lane.b32.xlu0 %v1016_v21, %s1058_s29  ;;  %v338_v22 = vld [vmem:[#allocation3 + $0x30] sm:$0xff] }
 0x117   :  { %392 = vrot.lane.b32.xlu1 %v346_v27, %s1058_s29 }
 0x118   :  { %1027 = vrot.lane.b32.xlu0 %v1026_v26, %s1057_s3 }
 0x11b   :  { %456 = vrot.lane.b32.xlu1 %v362_v29, %s1057_s3 }
 0x11c   :  { %424 = vrot.lane.b32.xlu0 %v354_v28, %s1059_s30 }
 0x11f   :  { %426 = vrot.lane.b32.xlu1 %v355_v31, %s1059_s30  ;;  %v339_v31 = vld [vmem:[#allocation3 + $0x38] sm:$0xff] }
 0x120   :  { %394 = vrot.lane.b32.xlu0 %v347_v30, %s1058_s29  ;;  %v370_v30 = vld [vmem:[#allocation3 + $0x34] sm:$0xff] }
 0x124   :  { %458 = vrot.lane.b32.xlu0 %v363_v32, %s1057_s3 }
 0x179   :  { %v998_v33 = vpop.permute.xlu1 %997 }
 0x17a   :  { %v988_v34 = vpop.permute.xlu0 %987  ;;  %v999_v42 = vunpack.i.l.bf16 %v998_v33  ;;  %v1000_v58 = vunpack.i.h.bf16 %v998_v33 }
 0x17b   :  { %v989_v35 = vunpack.i.l.bf16 %v988_v34  ;;  %v990_v36 = vunpack.i.h.bf16 %v988_v34 }
 0x17d   :  { %v1003_v38 = vpop.permute.xlu1 %1002  ;;  %v470_v44 = vsel %vm267_vm2, %v334_v41, %v989_v35  ;;  %v471_v52 = vsel %vm267_vm2, %v335_v47, %v990_v36  ;;  %v371_v36 = vld [vmem:[#allocation3 + $0x3c] sm:$0xff]  ;;  %v686_v41 = vld [vmem:[%s1396_s5 + $0x8] sm:$0xff] }
 0x17e   :  { %v993_v37 = vpop.permute.xlu0 %992  ;;  %v1005_v43 = vunpack.i.h.bf16 %v1003_v38  ;;  %v1004_v48 = vunpack.i.l.bf16 %v1003_v38  ;;  %v831_v47 = vld [vmem:[%s1395_s4] ss:$0 sm:$0xff] }
 0x17f   :  { %v995_v39 = vunpack.i.h.bf16 %v993_v37  ;;  %v994_v40 = vunpack.i.l.bf16 %v993_v37 }
 0x180   :  { %v468_v59 = vsel %vm267_vm2, %v332_v53, %v1005_v43  ;;  %v472_v2 = vsel %vm267_vm2, %v336_v61, %v1004_v48  ;;  %v687_v43 = vld [vmem:[%s1396_s5 + $0x10] sm:$0xff] }
 0x181   :  { %v479_v45 = vsel %vm476_vm3, %v470_v44, %v994_v40  ;;  %v1013_v50 = vpop.permute.xlu1 %1012  ;;  %v480_v57 = vsel %vm476_vm3, %v471_v52, %v995_v39  ;;  %v685_v40 = vld [vmem:[%s1396_s5] sm:$0xff]  ;;  %v688_v44 = vld [vmem:[%s1396_s5 + $0x18] sm:$0xff] }
 0x182   :  { %v1008_v49 = vpop.permute.xlu0 %1007  ;;  %v488_v51 = vsel %vm485_vm4, %v479_v45, %v999_v42  ;;  %v1015_v55 = vunpack.i.h.bf16 %v1013_v50  ;;  %v1014_v24 = vunpack.i.l.bf16 %v1013_v50  ;;  %v489_v1 = vsel %vm485_vm4, %v480_v57, %v1000_v58 }
 0x183   :  { %v1010_v54 = vunpack.i.h.bf16 %v1008_v49  ;;  %v1009_v46 = vunpack.i.l.bf16 %v1008_v49  ;;  %620 = vmatmul.mubr.f32.vlgmr.msra.gmra.mrb[0].mxu1 %v488_v51  ;;  %v950_v42 = vpack.c.bf16 %v686_v41, %v685_v40  ;;  %v954_v45 = vpack.c.bf16 %v688_v44, %v687_v43 }
 0x184   :  { %835 = vmatprep.mubr.msk.f32.mxu1 %vm267_vm2, %v367_v56 }
 0x185   :  { %v477_v60 = vsel %vm476_vm3, %v468_v59, %v1010_v54  ;;  %v1023_v63 = vpop.permute.xlu1 %1022  ;;  %v481_v7 = vsel %vm476_vm3, %v472_v2, %v1009_v46  ;;  %951 = vmatprep.subr.bf16.mxu0 %v950_v42 }
 0x186   :  { %v1018_v62 = vpop.permute.xlu0 %1017  ;;  %v486_v0 = vsel %vm485_vm4, %v477_v60, %v1015_v55  ;;  %v1025_v8 = vunpack.i.h.bf16 %v1023_v63  ;;  %v1024_v9 = vunpack.i.l.bf16 %v1023_v63  ;;  %v490_v16 = vsel %vm485_vm4, %v481_v7, %v1014_v24 }
 0x187   :  { %v1020_v3 = vunpack.i.h.bf16 %v1018_v62  ;;  %v1019_v4 = vunpack.i.l.bf16 %v1018_v62  ;;  %610 = vmatmul.mubr.f32.vlgmr.msra.gmra.mrb[16].mxu0 %v486_v0  ;;  %625 = vmatmul.mubr.f32.gmra.mrb[2].mxu1 %v489_v1 }
 0x188   :  { %833 = vmatprep.mubr.msk.f32.mxu0 %vm267_vm2, %v365_v5  ;;  %836 = vmatprep.mubr.msk.f32.mxu1 %vm267_vm2, %v368_v6 }
 0x189   :  { %v469_v12 = vsel %vm267_vm2, %v333_v10, %v1020_v3  ;;  %v473_v13 = vsel %vm267_vm2, %v337_v11, %v1019_v4  ;;  %v393_v15 = vpop.permute.xlu1 %392  ;;  %953 = vmatpush3.bf16.msra.mxu0 %v950_v42 }
 0x18a   :  { %v1028_v14 = vpop.permute.xlu0 %1027  ;;  %v478_v20 = vsel %vm476_vm3, %v469_v12, %v1025_v8  ;;  %v482_v21 = vsel %vm476_vm3, %v473_v13, %v1024_v9  ;;  %v474_v26 = vsel %vm267_vm2, %v338_v22, %v393_v15  ;;  %955 = vmatprep.subr.bf16.mxu0 %v954_v45 }
 0x18b   :  { %v1030_v17 = vunpack.i.h.bf16 %v1028_v14  ;;  %v1029_v18 = vunpack.i.l.bf16 %v1028_v14  ;;  %630 = vmatmul.mubr.f32.gmra.mrb[4].mxu1 %v490_v16 }
 0x18c   :  { %837 = vmatprep.mubr.msk.f32.mxu1 %vm267_vm2, %v369_v19 }
 0x18d   :  { %v487_v23 = vsel %vm485_vm4, %v478_v20, %v1030_v17  ;;  %v491_v25 = vsel %vm485_vm4, %v482_v21, %v1029_v18  ;;  %v457_v28 = vpop.permute.xlu1 %456  ;;  %957 = vmatpush3.bf16.msra.mxu0 %v954_v45 }
 0x18e   :  { %v425_v27 = vpop.permute.xlu0 %424  ;;  %615 = vmatmul.mubr.f32.gmra.mrb[18].mxu0 %v487_v23 }
 0x18f   :  { %v483_v29 = vsel %vm476_vm3, %v474_v26, %v425_v27  ;;  %635 = vmatmul.mubr.f32.gmra.mrb[6].mxu1 %v491_v25  ;;  %v840_v27 = vld [vmem:[%s1397_s6] ss:$0 sm:$0xff] }
 0x190   :  { %838 = vmatprep.mubr.msk.f32.mxu1 %vm267_vm2, %v370_v30  ;;  %v492_v33 = vsel %vm485_vm4, %v483_v29, %v457_v28 }
 0x191   :  { %v427_v35 = vpop.permute.xlu1 %426 }
 0x192   :  { %v395_v32 = vpop.permute.xlu0 %394 }
 0x193   :  { %v475_v34 = vsel %vm267_vm2, %v339_v31, %v395_v32  ;;  %640 = vmatmul.mubr.f32.gmra.mrb[8].mxu1 %v492_v33 }
 0x194   :  { %839 = vmatprep.mubr.msk.f32.mxu1 %vm267_vm2, %v371_v36  ;;  %v484_v37 = vsel %vm476_vm3, %v475_v34, %v427_v35 }
 0x196   :  { %v459_v38 = vpop.permute.xlu0 %458 }
 0x197   :  { %v493_v39 = vsel %vm485_vm4, %v484_v37, %v459_v38 }
 0x198   :  { %645 = vmatmul.mubr.f32.gmra.mrb[10].mxu1 %v493_v39 }
 0x256   :  { %v621_v48 = vpop.f32.mrb[0].mxu1 }
 0x257   :  { %v622_v49 = vadd.f32 %v831_v47, %v621_v48  ;;  %v623_v50 = vpop.f32.mrb[1].mxu1 }
 0x259   :  { %v652_v51 = vmax.f32 %v622_v49, 0.0 }
 0x25a   :  { %v611_v52 = vpop.f32.mrb[16].mxu0  ;;  %v626_v53 = vpop.f32.mrb[2].mxu1 }
 0x25b   :  { %660 = vst.msk [vmem:[#allocation4 + $0x10] sm:$0xff] %vm267_vm2, %v652_v51  ;;  %v612_v54 = vadd.f32 %v831_v47, %v611_v52  ;;  %v627_v46 = vadd.f32 %v831_v47, %v626_v53  ;;  %v613_v55 = vpop.f32.mrb[17].mxu0  ;;  %v628_v56 = vpop.f32.mrb[3].mxu1 }
 0x25d   :  { %v650_v57 = vmax.f32 %v612_v54, 0.0  ;;  %v653_v58 = vmax.f32 %v627_v46, 0.0 }
 0x25e   :  { %v631_v59 = vpop.f32.mrb[4].mxu1 }
 0x25f   :  { %658 = vst.msk [vmem:[#allocation4] sm:$0xff] %vm267_vm2, %v650_v57  ;;  %661 = vst.msk [vmem:[#allocation4 + $0x18] sm:$0xff] %vm267_vm2, %v653_v58  ;;  %v632_v60 = vadd.f32 %v831_v47, %v631_v59  ;;  %v633_v61 = vpop.f32.mrb[5].mxu1 }
 0x261   :  { %v654_v24 = vmax.f32 %v632_v60, 0.0  ;;  %v616_v62 = vpop.f32.mrb[18].mxu0 }
 0x262   :  { %v617_v63 = vadd.f32 %v831_v47, %v616_v62  ;;  %v618_v0 = vpop.f32.mrb[19].mxu0  ;;  %v636_v1 = vpop.f32.mrb[6].mxu1 }
 0x263   :  { %662 = vst.msk [vmem:[#allocation4 + $0x20] sm:$0xff] %vm267_vm2, %v654_v24  ;;  %v637_v2 = vadd.f32 %v831_v47, %v636_v1  ;;  %v638_v3 = vpop.f32.mrb[7].mxu1 }
 0x264   :  { %v651_v4 = vmax.f32 %v617_v63, 0.0 }
 0x265   :  { %v655_v5 = vmax.f32 %v637_v2, 0.0 }
 0x266   :  { %659 = vst.msk [vmem:[#allocation4 + $0x8] sm:$0xff] %vm267_vm2, %v651_v4  ;;  %v641_v6 = vpop.f32.mrb[8].mxu1  ;;  %v668_v13 = vld [vmem:[#allocation4 + $0x10] ss:$2 sm:$0xff]  ;;  %v676_v14 = vld [vmem:[#allocation4 + $0x11] ss:$2 sm:$0xff] }
 0x267   :  { %663 = vst.msk [vmem:[#allocation4 + $0x28] sm:$0xff] %vm267_vm2, %v655_v5  ;;  %v642_v7 = vadd.f32 %v831_v47, %v641_v6  ;;  %v643_v8 = vpop.f32.mrb[9].mxu1  ;;  %v682_v21 = vmax.f32 %v668_v13, %v676_v14 }
 0x269   :  { %v656_v9 = vmax.f32 %v642_v7, 0.0 }
 0x26b   :  { %664 = vst.msk [vmem:[#allocation4 + $0x30] sm:$0xff] %vm267_vm2, %v656_v9  ;;  %v646_v10 = vpop.f32.mrb[10].mxu1 }
 0x26c   :  { %v647_v11 = vadd.f32 %v831_v47, %v646_v10  ;;  %v648_v12 = vpop.f32.mrb[11].mxu1 }
 0x26d   :  { %v666_v15 = vld [vmem:[#allocation4] ss:$2 sm:$0xff]  ;;  %v674_v16 = vld [vmem:[#allocation4 + $0x1] ss:$2 sm:$0xff] }
 0x26e   :  { %v657_v17 = vmax.f32 %v647_v11, 0.0  ;;  %v681_v18 = vmax.f32 %v666_v15, %v674_v16  ;;  %v670_v19 = vld [vmem:[#allocation4 + $0x20] ss:$2 sm:$0xff]  ;;  %v678_v20 = vld [vmem:[#allocation4 + $0x21] ss:$2 sm:$0xff] }
 0x26f   :  { %v683_v22 = vmax.f32 %v670_v19, %v678_v20 }
 0x270   :  { %665 = vst.msk [vmem:[#allocation4 + $0x38] sm:$0xff] %vm267_vm2, %v657_v17  ;;  %910 = vmatprep.mubr.msk.f32.mxu0 %vm267_vm2, %v681_v18 }
 0x271   :  { %911 = vmatmul.mubr.msk.f32.vlgmr.msra.gmra.mrb[20].mxu0 %vm267_vm2, %v682_v21 }
 0x272   :  { %913 = vmatprep.mubr.msk.f32.mxu0 %vm267_vm2, %v683_v22 }
 0x277   :  { %v672_v23 = vld [vmem:[#allocation4 + $0x30] ss:$2 sm:$0xff]  ;;  %v680_v25 = vld [vmem:[#allocation4 + $0x31] ss:$2 sm:$0xff] }
 0x278   :  { %v684_v26 = vmax.f32 %v672_v23, %v680_v25 }
 0x27a   :  { %914 = vmatmul.mubr.msk.f32.gmra.mrb[22].mxu0 %vm267_vm2, %v684_v26 }
 0x344   :  { %v912_v28 = vpop.f32.mrb[20].mxu0 }
 0x345   :  { %v780_v29 = vadd.f32 %v912_v28, %v840_v27  ;;  %v774_v30 = vpop.f32.mrb[21].mxu0 }
 0x346   :  { %v775_v31 = vadd.f32 %v840_v27, %v774_v30 }
 0x347   :  { %794 = vst [vmem:[#allocation5 + $0x8] sm:$0xff] %v780_v29 }
 0x348   :  { %793 = vst [vmem:[#allocation5] sm:$0xff] %v775_v31 }
 0x34d   :  { %v915_v32 = vpop.f32.mrb[22].mxu0 }
 0x34e   :  { %v790_v33 = vadd.f32 %v915_v32, %v840_v27  ;;  %v784_v34 = vpop.f32.mrb[23].mxu0 }
 0x34f   :  { %v785_v35 = vadd.f32 %v840_v27, %v784_v34 }
 0x350   :  { %796 = vst [vmem:[#allocation5 + $0x18] sm:$0xff] %v790_v33 }
 0x351   :  { %795 = vst [vmem:[#allocation5 + $0x10] sm:$0xff] %v785_v35 }
 0x352   :  { %1042 = shalt.err (!%p1039_p4)
}
 0x353   :  { %s1043_s20 = scalar_lea.hbm %s1398_s7, 512 }
 0x354   :  { %p1044_p5 = scmp.ne.s32.totalorder %s1398_s7, %s1043_s20  ;;  %p1047_p6 = scmp.lt.u32.totalorder %s1043_s20, %s1398_s7 }
 0x356   :  { %p1049_p7 = pnand %p1047_p6, %p1044_p5 }
 0x358   :  { %1052 = shalt.err (!%p1049_p7)
}
 0x359   :  { %s1061_s24 = smov 128   ;;  %s1062_s25 = smov 8  }
 0x35a   :  { %808 = dma.vmem_to_hbm [thread:$0]  %s803_s18, 512, %s1398_s7, [#allocation6], %s1061_s24, %s1061_s24, %s1062_s25  }
 0x35b   :  { %1053 = dma.done.wait [#allocation6], 512  }
 0x35c   :  { %1054 = vsyncadd [#allocation6], 4294966784 }
 0x35d   :  { %812 = vsyncpa [#allocation6], 1 }

</bundles_post_ra>
